<compile_context>
chip_gen: v5e
topology: v5e:2x2
jax: 0.10.0
libtpu: 0.0.40
codegen_flags: <defaults>
</compile_context>

<pallas_src>
import functools

import jax
import jax.numpy as jnp
from jax.experimental import pallas as pl
from jax.experimental.pallas import tpu as pltpu

BN_EPS = 1e-5
NEG_SLOPE = 0.2          # GATConv default LeakyReLU slope
NEG_INF = -1e30


def _elu(x):
    # exp(min(x, 0)) keeps the unselected branch finite for large positive x.
    return jnp.where(x > 0, x, jnp.exp(jnp.minimum(x, 0.0)) - 1.0)


# ---------------------------------------------------------------------------
# Kernel 1: shared GAT projection.
#   One wide MXU matmul x @ [W | W_as | W_ad] produces the projected features
#   h (stored bf16 for the value path) and the per-node attention terms
#   a_src = (h_head . att_src), a_dst = (h_head . att_dst) for all heads.
# ---------------------------------------------------------------------------
def gat_project_kernel(x_ref, wcat_ref, h_ref, asrc_ref, adst_ref, *,
                       hidden, heads):
    hc = jnp.dot(x_ref[...], wcat_ref[...],
                 preferred_element_type=jnp.float32)        # [TM, hidden + 2H]
    h_ref[...] = hc[:, :hidden].astype(h_ref.dtype)
    asrc_ref[...] = hc[:, hidden:hidden + heads]
    adst_ref[...] = hc[:, hidden + heads:hidden + 2 * heads]


# ---------------------------------------------------------------------------
# Kernel 2: GAT attention + bias + BatchNorm1d(eval) + ELU, fused.
#   Grid tiles destination rows; adjacency tile is (TM, N) bf16.  Self-loops
#   (GATConv's set_diag) are injected with an iota compare.
# ---------------------------------------------------------------------------
def gat_attn_bn_elu_kernel(adj_ref, adst_ref, asrcT_ref, h_ref,
                           scale_ref, shift_ref, out_ref, *,
                           heads, head_dim, row_tile):
    adj = adj_ref[...]                                      # [TM, N] bf16 0/1
    tm, n = adj.shape
    row0 = pl.program_id(0) * row_tile
    rows = jax.lax.broadcasted_iota(jnp.int32, (tm, n), 0) + row0
    cols = jax.lax.broadcasted_iota(jnp.int32, (tm, n), 1)
    mask = jnp.logical_or(adj > 0, rows == cols)            # edges + self-loops

    for hd in range(heads):
        lo = hd * head_dim
        a_dst = adst_ref[:, hd:hd + 1]                      # [TM, 1]
        a_src = asrcT_ref[hd:hd + 1, :]                     # [1, N]
        e = a_dst + a_src                                   # e[i,j] = a_d[i] + a_s[j]
        e = jnp.where(e > 0, e, NEG_SLOPE * e)              # LeakyReLU(0.2)
        e = jnp.where(mask, e, NEG_INF)                     # mask non-edges
        m = jnp.max(e, axis=1, keepdims=True)
        p = jnp.where(mask, jnp.exp(e - m), 0.0)
        denom = jnp.sum(p, axis=1, keepdims=True)           # >= 1 (self-loop)
        p = p * pl.reciprocal(denom, approx=True)           # softmax over sources

        hh = h_ref[:, lo:lo + head_dim]                     # [N, F] bf16
        y = jnp.dot(p.astype(jnp.bfloat16), hh,
                    preferred_element_type=jnp.float32)     # [TM, F]
        # GAT bias + BN1(eval) folded into scale/shift, then ELU; stream each
        # head straight into its output column slice.
        y = y * scale_ref[:, lo:lo + head_dim] + shift_ref[:, lo:lo + head_dim]
        out_ref[:, lo:lo + head_dim] = _elu(y)


# ---------------------------------------------------------------------------
# Kernel 3: GINConv(Linear) + BatchNorm1d(eval) + ELU, fused.
#   BN2 is folded into (w2, b2) on the host; eps is an SMEM scalar.
#   GIN does NOT add self-loops.
# ---------------------------------------------------------------------------
def gin_bn_elu_kernel(eps_ref, adj_ref, x_tile_ref, x_full_ref,
                      w2_ref, b2_ref, out_ref):
    agg = jnp.dot(adj_ref[...],                             # [TM, N] bf16 0/1
                  x_full_ref[...].astype(jnp.bfloat16),     # [N, hidden]
                  preferred_element_type=jnp.float32)       # sum_j x_j
    z = (1.0 + eps_ref[0]) * x_tile_ref[...] + agg
    y = jnp.dot(z, w2_ref[...], preferred_element_type=jnp.float32) + b2_ref[...]
    out_ref[...] = _elu(y)


# ---------------------------------------------------------------------------
# Wrapper: host-side parameter folding + pallas_call plumbing.
# ---------------------------------------------------------------------------
def _pick_row_tile(n, n_cols, max_row_tile=512,
                   vmem_budget_bytes=8 * 1024 * 1024):
    """Largest row tile (multiple of 16, dividing n) so that the double-buffered
    bf16 (tile x n_cols) adjacency tile stays within a VMEM budget."""
    cap = max(16, vmem_budget_bytes // max(1, 2 * 2 * n_cols))   # 2 bufs * 2 B
    cap = min(cap, max_row_tile)
    if n <= cap:
        return n
    if n % 16 != 0:
        return n          # fall back to one full block (block == array dims)
    t = cap - (cap % 16)
    while t >= 16:
        if n % t == 0:
            return t
        t -= 16
    return n


def gnn_encoder_forward(x, adj, params, *, heads, max_row_tile=512):
    n, c_in = x.shape
    hidden = params["w_gat"].shape[1]
    out_c = params["w_gin"].shape[1]
    head_dim = hidden // heads

    tm = _pick_row_tile(n, n, max_row_tile=max_row_tile)
    assert n % tm == 0, (n, tm)
    num_tiles = n // tm

    cparams = pltpu.CompilerParams(
        dimension_semantics=("parallel",),        # shard row tiles across TCs
        vmem_limit_bytes=32 * 1024 * 1024)

    def tiled(cols):
        return pl.BlockSpec((tm, cols), lambda i: (i, 0))

    def resident(shape):
        nd = len(shape)
        return pl.BlockSpec(shape, lambda i, _nd=nd: (0,) * _nd)

    # --- host-side parameter folding (O(params), once) -----------------------
    w3 = params["w_gat"].reshape(c_in, heads, head_dim)
    w_as = jnp.einsum("chf,hf->ch", w3, params["att_src"])        # [Cin, H]
    w_ad = jnp.einsum("chf,hf->ch", w3, params["att_dst"])        # [Cin, H]
    w_cat = jnp.concatenate([params["w_gat"], w_as, w_ad], axis=1)

    inv1 = params["bn1_gamma"] * jax.lax.rsqrt(params["bn1_var"] + BN_EPS)
    scale1 = inv1                                                  # [1, hidden]
    shift1 = (params["b_gat"] - params["bn1_mean"]) * inv1 + params["bn1_beta"]

    inv2 = params["bn2_gamma"] * jax.lax.rsqrt(params["bn2_var"] + BN_EPS)
    w2_fold = params["w_gin"] * inv2                               # [hidden, out]
    b2_fold = (params["b_gin"] - params["bn2_mean"]) * inv2 + params["bn2_beta"]

    adj_bf16 = adj.astype(jnp.bfloat16)   # 0/1 mask exact in bf16; halves N^2 traffic

    # dropout: identity in eval mode.

    # --- kernel 1: projection + folded attention terms -----------------------
    h, a_src, a_dst = pl.pallas_call(
        functools.partial(gat_project_kernel, hidden=hidden, heads=heads),
        out_shape=(jax.ShapeDtypeStruct((n, hidden), jnp.bfloat16),
                   jax.ShapeDtypeStruct((n, heads), jnp.float32),
                   jax.ShapeDtypeStruct((n, heads), jnp.float32)),
        grid=(num_tiles,),
        in_specs=[tiled(c_in), resident(w_cat.shape)],
        out_specs=(tiled(hidden), tiled(heads), tiled(heads)),
        compiler_params=cparams,
    )(x, w_cat)

    a_srcT = jnp.transpose(a_src)        # [H, N] layout plumbing (lane-major rows)

    # --- kernel 2: GAT attention + bias + BN1 + ELU ---------------------------
    x1 = pl.pallas_call(
        functools.partial(gat_attn_bn_elu_kernel, heads=heads,
                          head_dim=head_dim, row_tile=tm),
        out_shape=jax.ShapeDtypeStruct((n, hidden), jnp.float32),
        grid=(num_tiles,),
        in_specs=[tiled(n),                    # adj tile (bf16)
                  tiled(heads),                # a_dst for the tile rows
                  resident(a_srcT.shape),      # a_src for all source nodes
                  resident(h.shape),           # projected features (bf16)
                  resident(scale1.shape),
                  resident(shift1.shape)],
        out_specs=tiled(hidden),
        compiler_params=cparams,
    )(adj_bf16, a_dst, a_srcT, h, scale1, shift1)

    # --- kernel 3: GIN + BN2 + ELU --------------------------------------------
    out = pl.pallas_call(
        gin_bn_elu_kernel,
        out_shape=jax.ShapeDtypeStruct((n, out_c), jnp.float32),
        grid=(num_tiles,),
        in_specs=[pl.BlockSpec(memory_space=pltpu.MemorySpace.SMEM),  # eps scalar
                  tiled(n),                    # adj tile (bf16, no self-loops)
                  tiled(hidden),               # x1 tile  ((1+eps) * x_i term)
                  resident(x1.shape),          # x1 full  (neighborhood sum)
                  resident(w2_fold.shape),
                  resident(b2_fold.shape)],
        out_specs=tiled(out_c),
        compiler_params=cparams,
    )(params["gin_eps"], adj_bf16, x1, x1, w2_fold, b2_fold)
    return out


# ---------------------------------------------------------------------------
# Pure-JAX f32 reference of the same eval-mode forward (for sanity checking).
# ---------------------------------------------------------------------------
def _reference_forward(x, adj, params, *, heads):
    n = x.shape[0]
    hidden = params["w_gat"].shape[1]
    f = hidden // heads
    h = x @ params["w_gat"]
    h3 = h.reshape(n, heads, f)
    a_src = jnp.einsum("nhf,hf->nh", h3, params["att_src"])
    a_dst = jnp.einsum("nhf,hf->nh", h3, params["att_dst"])
    adj_sl = jnp.maximum(adj, jnp.eye(n, dtype=adj.dtype))
    outs = []
    for hd in range(heads):
        e = a_dst[:, hd][:, None] + a_src[:, hd][None, :]
        e = jnp.where(e > 0, e, NEG_SLOPE * e)
        e = jnp.where(adj_sl > 0, e, -jnp.inf)
        p = jax.nn.softmax(e, axis=1)
        outs.append(p @ h3[:, hd, :])
    y = jnp.concatenate(outs, axis=1) + params["b_gat"]
    y = ((y - params["bn1_mean"]) * jax.lax.rsqrt(params["bn1_var"] + BN_EPS)
         * params["bn1_gamma"] + params["bn1_beta"])
    x1 = jnp.where(y > 0, y, jnp.exp(jnp.minimum(y, 0.0)) - 1.0)
    agg = adj @ x1
    z = (1.0 + params["gin_eps"][0]) * x1 + agg
    y2 = z @ params["w_gin"] + params["b_gin"]
    y2 = ((y2 - params["bn2_mean"]) * jax.lax.rsqrt(params["bn2_var"] + BN_EPS)
          * params["bn2_gamma"] + params["bn2_beta"])
    return jnp.where(y2 > 0, y2, jnp.exp(jnp.minimum(y2, 0.0)) - 1.0)


if __name__ == "__main__":
    N, C_IN, HIDDEN, HEADS, C_OUT = 128, 8, 32, 4, 16
    F_HEAD = HIDDEN // HEADS
    NUM_EDGES = 512

    key = jax.random.PRNGKey(0)
    ks = jax.random.split(key, 8)

    # Node features and a random directed edge list.
    x = jax.random.normal(ks[0], (N, C_IN), dtype=jnp.float32)
    src = jax.random.randint(ks[1], (NUM_EDGES,), 0, N)
    dst = jax.random.randint(ks[2], (NUM_EDGES,), 0, N)
    edge_index = jnp.stack([src, dst])  # [2, E]

    # Dense adjacency mask: row = edge_index[0] aggregates col = edge_index[1].
    adj = jnp.zeros((N, N), jnp.float32).at[edge_index[0], edge_index[1]].set(1.0)

    # Deterministic synthetic parameters (shapes from the module __init__).
    params = {
        # GATConv(in_channels, hidden//heads, heads)
        "w_gat": 0.2 * jax.random.normal(ks[3], (C_IN, HIDDEN), jnp.float32),
        "att_src": 0.2 * jax.random.normal(ks[4], (HEADS, F_HEAD), jnp.float32),
        "att_dst": 0.2 * jax.random.normal(ks[5], (HEADS, F_HEAD), jnp.float32),
        "b_gat": jnp.zeros((1, HIDDEN), jnp.float32),
        # BatchNorm1d(hidden) — fresh-module defaults
        "bn1_gamma": jnp.ones((1, HIDDEN), jnp.float32),
        "bn1_beta": jnp.zeros((1, HIDDEN), jnp.float32),
        "bn1_mean": jnp.zeros((1, HIDDEN), jnp.float32),
        "bn1_var": jnp.ones((1, HIDDEN), jnp.float32),
        # GINConv(Linear(hidden, out), train_eps=True) — eps starts at 0
        "w_gin": 0.2 * jax.random.normal(ks[6], (HIDDEN, C_OUT), jnp.float32),
        "b_gin": 0.1 * jax.random.normal(ks[7], (1, C_OUT), jnp.float32),
        "gin_eps": jnp.zeros((1,), jnp.float32),
        # BatchNorm1d(out) — fresh-module defaults
        "bn2_gamma": jnp.ones((1, C_OUT), jnp.float32),
        "bn2_beta": jnp.zeros((1, C_OUT), jnp.float32),
        "bn2_mean": jnp.zeros((1, C_OUT), jnp.float32),
        "bn2_var": jnp.ones((1, C_OUT), jnp.float32),
    }

    # max_row_tile=64 -> 2 grid steps at N=128, exercising the tiled pipeline.
    out = gnn_encoder_forward(x, adj, params, heads=HEADS, max_row_tile=64)
    out = jax.block_until_ready(out)

    ref = _reference_forward(x, adj, params, heads=HEADS)
    assert out.shape == (N, C_OUT), out.shape
    assert bool(jnp.all(jnp.isfinite(out)))
    # Loose tolerance: value-path matmuls (p@h, adj@x1) run in bf16 on the MXU.
    assert bool(jnp.max(jnp.abs(out - ref)) < 0.1), float(jnp.max(jnp.abs(out - ref)))
    print("KERNEL_OK")
</pallas_src>

<mosaic_0001>
module attributes {stable_mosaic.version = 11 : i64} {
  func.func @gat_project_kernel(%arg0: i32, %arg1: memref<64x8xf32, #tpu.memory_space<vmem>>, %arg2: memref<8x40xf32, #tpu.memory_space<vmem>>, %arg3: memref<64x32xbf16, #tpu.memory_space<vmem>>, %arg4: memref<64x4xf32, #tpu.memory_space<vmem>>, %arg5: memref<64x4xf32, #tpu.memory_space<vmem>>) attributes {dimension_semantics = [#tpu.dimension_semantics<parallel>], iteration_bounds = array<i64: 2>, scalar_prefetch = 0 : i64, scratch_operands = 0 : i64, tpu.core_type = #tpu.core_type<tc>, window_params = [{transform_indices = @transform_0, window_bounds = array<i64: 64, 8>}, {pipeline_mode = #tpu.pipeline_mode<synchronous>, transform_indices = @transform_1, window_bounds = array<i64: 8, 40>}, {transform_indices = @transform_2, window_bounds = array<i64: 64, 32>}, {transform_indices = @transform_3, window_bounds = array<i64: 64, 4>}, {transform_indices = @transform_4, window_bounds = array<i64: 64, 4>}]} {
    %c0 = arith.constant 0 : index
    %c0_0 = arith.constant 0 : index
    %0 = vector.load %arg1[%c0, %c0_0] : memref<64x8xf32, #tpu.memory_space<vmem>>, vector<64x8xf32>
    %c0_1 = arith.constant 0 : index
    %c0_2 = arith.constant 0 : index
    %1 = vector.load %arg2[%c0_1, %c0_2] : memref<8x40xf32, #tpu.memory_space<vmem>>, vector<8x40xf32>
    %cst = arith.constant dense<0.000000e+00> : vector<64x40xf32>
    %2 = tpu.matmul %0, %1, %cst {dimension_numbers = #tpu.dot_dimension_numbers<[1], [0], [0], [1], [0, 0, 1, 1], [], []>} : vector<64x8xf32>, vector<8x40xf32>, vector<64x40xf32> -> vector<64x40xf32>
    %3 = vector.extract_strided_slice %2 {offsets = [0, 0], sizes = [64, 32], strides = [1, 1]} : vector<64x40xf32> to vector<64x32xf32>
    %4 = arith.truncf %3 : vector<64x32xf32> to vector<64x32xbf16>
    %c0_3 = arith.constant 0 : index
    %c0_4 = arith.constant 0 : index
    %5 = vector.load %arg3[%c0_3, %c0_4] : memref<64x32xbf16, #tpu.memory_space<vmem>>, vector<64x32xbf16>
    tpu.vector_store %arg3[%c0_3, %c0_4], %4 {strides = array<i32>} : memref<64x32xbf16, #tpu.memory_space<vmem>>, vector<64x32xbf16>,
    %6 = vector.extract_strided_slice %2 {offsets = [0, 32], sizes = [64, 4], strides = [1, 1]} : vector<64x40xf32> to vector<64x4xf32>
    %c0_5 = arith.constant 0 : index
    %c0_6 = arith.constant 0 : index
    %7 = vector.load %arg4[%c0_5, %c0_6] : memref<64x4xf32, #tpu.memory_space<vmem>>, vector<64x4xf32>
    tpu.vector_store %arg4[%c0_5, %c0_6], %6 {strides = array<i32>} : memref<64x4xf32, #tpu.memory_space<vmem>>, vector<64x4xf32>,
    %8 = vector.extract_strided_slice %2 {offsets = [0, 36], sizes = [64, 4], strides = [1, 1]} : vector<64x40xf32> to vector<64x4xf32>
    %c0_7 = arith.constant 0 : index
    %c0_8 = arith.constant 0 : index
    %9 = vector.load %arg5[%c0_7, %c0_8] : memref<64x4xf32, #tpu.memory_space<vmem>>, vector<64x4xf32>
    tpu.vector_store %arg5[%c0_7, %c0_8], %8 {strides = array<i32>} : memref<64x4xf32, #tpu.memory_space<vmem>>, vector<64x4xf32>,
    return
  }
  func.func @transform_0(%arg0: i32) -> (i32, i32) {
    %c0_i32 = arith.constant 0 : i32
    %c0_i32_0 = arith.constant 0 : i32
    return %arg0, %c0_i32 : i32, i32
  }
  func.func @transform_1(%arg0: i32) -> (i32, i32) {
    %c0_i32 = arith.constant 0 : i32
    %c0_i32_0 = arith.constant 0 : i32
    %c0_i32_1 = arith.constant 0 : i32
    return %c0_i32, %c0_i32_0 : i32, i32
  }
  func.func @transform_2(%arg0: i32) -> (i32, i32) {
    %c0_i32 = arith.constant 0 : i32
    %c0_i32_0 = arith.constant 0 : i32
    return %arg0, %c0_i32 : i32, i32
  }
  func.func @transform_3(%arg0: i32) -> (i32, i32) {
    %c0_i32 = arith.constant 0 : i32
    %c0_i32_0 = arith.constant 0 : i32
    return %arg0, %c0_i32 : i32, i32
  }
  func.func @transform_4(%arg0: i32) -> (i32, i32) {
    %c0_i32 = arith.constant 0 : i32
    %c0_i32_0 = arith.constant 0 : i32
    return %arg0, %c0_i32 : i32, i32
  }
}

</mosaic_0001>

<bundles_post_ra>
// kernel: tpu_custom_call.1
= control target key start
LH: loop header
LB: loop body
LE: loop exit
PB: predicated region body
PF: predicated region fallthrough
CT: control target
= control target key end

     0   :  { %s588_s15 = smov 0   ;;  %s687_s0 = inlined_call_operand.vmem [shape: f32[128,8], index: 0, kind: input, shape index: {}]   ;;  %s688_s1 = inlined_call_operand.vmem [shape: f32[8,40], index: 1, kind: input, shape index: {}]   ;;  %s689_s2 = inlined_call_operand.vmem [shape: bf16[128,32], index: 2, kind: output, shape index: {0}]   ;;  %s690_s3 = inlined_call_operand.vmem [shape: f32[128,4], index: 3, kind: output, shape index: {1}]   ;;  %s691_s4 = inlined_call_operand.vmem [shape: f32[128,4], index: 4, kind: output, shape index: {2}]  }
   0x1 LB: > { %s517_s16 = sadd.s32 4294967295, %s559_s15   ;;  %p521_p0 = scmp.ge.s32.totalorder %s559_s15, 1  ;;  %s559_s15 = sphi %s588_s15, %s15_s15  }
   0x2   : > { %p168_p1 = scmp.lt.s32.totalorder %s559_s15, 3 }
   0x4   : > { %p169_p2 = pnand %p521_p0, %p168_p1 }
   0x5   : > { %s522_s19 = sshll.u32 (!%p169_p2), %s517_s16, 3  ;;  %s561_s28 = smov (!%p169_p2), 96  }
   0x6   : > { %172 = sbr.rel (%p169_p2) target bundleno = 298 (0x12a), region = 28  ;;  %p205_p3 = scmp.lt.s32.totalorder (!%p169_p2), %s522_s19, 15 }
   0x7   : > { %s562_s29 = smov (!%p169_p2), 92  }
   0xb   : > { %v236_v0 = vld [vmem:[%s688_s1] sm:$0xff]  ;;  %s693_s19 = smov (!%p205_p3, %s522_s19), 15  ;;  %vm237_vm0 = vcmask 64512   ;;  %vm311_vm1 = vcmask 257024   ;;  %vm352_vm2 = vcmask 31744  }
   0xc   : > { %277 = vmatpush.msra.mxu0 %v236_v0  ;;  %540 = vmatpush.msra.mxu1 %v236_v0  ;;  %s599_s20 = sshll.u32 %s693_s19, 3  ;;  %s525_s24 = sshll.u32 %s693_s19, 2 }
   0xd   : > { %541 = vmatpush.msra.mxu2 %v236_v0  ;;  %542 = vmatpush.msra.mxu3 %v236_v0  ;;  %s208_s23 = scalar_lea.vmem %s687_s0, %s599_s20  ;;  %s616_s27 = scalar_lea.vmem %s689_s2, %s525_s24 }
   0xe   : > { %v228_v1 = vld [vmem:[%s208_s23] sm:$0xff]  ;;  %v230_v2 = vld [vmem:[%s208_s23 + $0x10] sm:$0xff]  ;;  %v231_v5 = vld [vmem:[%s208_s23 + $0x18] sm:$0xff]  ;;  %s654_s6 = scalar_lea.vmem %s691_s4, %s599_s20  ;;  %s220_s9 = scalar_lea.vmem %s690_s3, %s599_s20 }
   0xf   : > { %v232_v3 = vld [vmem:[%s208_s23 + $0x20] sm:$0xff]  ;;  %530 = vmatmul.msk.f32.vlgmr.msra.gmra.mxu0 %vm237_vm0, %v228_v1  ;;  %532 = vmatmul.msk.f32.vlgmr.msra.gmra.mxu1 %vm237_vm0, %v230_v2  ;;  %v234_v4 = vld [vmem:[%s208_s23 + $0x30] sm:$0xff]  ;;  %v229_v6 = vld [vmem:[%s208_s23 + $0x8] sm:$0xff] }
  0x10   : > { %534 = vmatmul.msk.f32.vlgmr.msra.gmra.mxu2 %vm237_vm0, %v232_v3  ;;  %536 = vmatmul.msk.f32.vlgmr.msra.gmra.mxu3 %vm237_vm0, %v234_v4  ;;  %v233_v7 = vld [vmem:[%s208_s23 + $0x28] sm:$0xff]  ;;  %v235_v8 = vld [vmem:[%s208_s23 + $0x38] sm:$0xff] }
  0x17   : > { %533 = vmatmul.msk.f32.gmra.mxu1 %vm237_vm0, %v231_v5  ;;  %531 = vmatmul.msk.f32.gmra.mxu0 %vm237_vm0, %v229_v6 }
  0x18   : > { %535 = vmatmul.msk.f32.gmra.mxu2 %vm237_vm0, %v233_v7  ;;  %537 = vmatmul.msk.f32.gmra.mxu3 %vm237_vm0, %v235_v8 }
  0x8c   : > { %v279_v9 = vpop.f32.mrf.mxu0  ;;  %v285_v10 = vpop.f32.mrf.mxu1 }
  0x8d   : > { %v303_v11 = vpack.c.bf16 %v279_v9, %v279_v9  ;;  %v305_v12 = vpack.c.bf16 %v285_v10, %v285_v10  ;;  %332 = vrot.lane.b32.xlu1 %v285_v10, %s561_s28  ;;  %361 = vrot.lane.b32.xlu2 %v279_v9, %s562_s29 }
  0x8e   : > { %328 = vrot.lane.b32.xlu0 %v279_v9, %s561_s28 }
  0x8f   : > { %312 = vst.msk [vmem:[%s616_s27] sm:$0xf] %vm311_vm1, %v303_v11 }
  0x90   : > { %314 = vst.msk [vmem:[%s616_s27 + $0x8] sm:$0xf] %vm311_vm1, %v305_v12 }
  0x93   : > { %v291_v13 = vpop.f32.mrf.mxu2  ;;  %v297_v14 = vpop.f32.mrf.mxu3 }
  0x94   : > { %v307_v15 = vpack.c.bf16 %v291_v13, %v291_v13  ;;  %v309_v16 = vpack.c.bf16 %v297_v14, %v297_v14  ;;  %v288_v17 = vpop.f32.mrf.mxu1  ;;  %v282_v18 = vpop.f32.mrf.mxu0 }
  0x95   : > { %365 = vrot.lane.b32.xlu1 %v285_v10, %s562_s29  ;;  %336 = vrot.lane.b32.xlu2 %v291_v13, %s561_s28  ;;  %v306_v19 = vpack.c.bf16 %v288_v17, %v288_v17  ;;  %v304_v20 = vpack.c.bf16 %v282_v18, %v282_v18 }
  0x96   : > { %316 = vst.msk [vmem:[%s616_s27 + $0x10] sm:$0xf] %vm311_vm1, %v307_v15  ;;  %340 = vrot.lane.b32.xlu0 %v297_v14, %s561_s28 }
  0x97   : > { %318 = vst.msk [vmem:[%s616_s27 + $0x18] sm:$0xf] %vm311_vm1, %v309_v16 }
  0x98   : > { %315 = vst.msk [vmem:[%s616_s27 + $0xc] sm:$0xf] %vm311_vm1, %v306_v19 }
  0x99   : > { %313 = vst.msk [vmem:[%s616_s27 + $0x4] sm:$0xf] %vm311_vm1, %v304_v20 }
  0x9b   : > { %v294_v21 = vpop.f32.mrf.mxu2  ;;  %v300_v22 = vpop.f32.mrf.mxu3 }
  0x9c   : > { %v308_v23 = vpack.c.bf16 %v294_v21, %v294_v21  ;;  %v310_v24 = vpack.c.bf16 %v300_v22, %v300_v22 }
  0x9d   : > { %367 = vrot.lane.b32.xlu2 %v288_v17, %s562_s29  ;;  %334 = vrot.lane.b32.xlu1 %v288_v17, %s561_s28 }
  0x9e   : > { %369 = vrot.lane.b32.xlu0 %v291_v13, %s562_s29  ;;  %317 = vst.msk [vmem:[%s616_s27 + $0x14] sm:$0xf] %vm311_vm1, %v308_v23 }
  0x9f   : > { %319 = vst.msk [vmem:[%s616_s27 + $0x1c] sm:$0xf] %vm311_vm1, %v310_v24 }
  0xa5   : > { %338 = vrot.lane.b32.xlu2 %v294_v21, %s561_s28  ;;  %342 = vrot.lane.b32.xlu1 %v300_v22, %s561_s28 }
  0xa6   : > { %330 = vrot.lane.b32.xlu0 %v282_v18, %s561_s28 }
  0xad   : > { %373 = vrot.lane.b32.xlu2 %v297_v14, %s562_s29  ;;  %371 = vrot.lane.b32.xlu1 %v294_v21, %s562_s29 }
  0xae   : > { %363 = vrot.lane.b32.xlu0 %v282_v18, %s562_s29 }
  0xb6   : > { %375 = vrot.lane.b32.xlu0 %v300_v22, %s562_s29 }
  0xe7   : > { %v362_v25 = vpop.permute.xlu2 %361 }
  0xe8   : > { %385 = vst.msk [vmem:[%s654_s6] sm:$0xff] %vm352_vm2, %v362_v25 }
  0xef   : > { %v337_v26 = vpop.permute.xlu2 %336 }
  0xf0   : > { %357 = vst.msk [vmem:[%s220_s9 + $0x20] sm:$0xff] %vm352_vm2, %v337_v26 }
  0xf7   : > { %v368_v27 = vpop.permute.xlu2 %367 }
  0xf8   : > { %388 = vst.msk [vmem:[%s654_s6 + $0x18] sm:$0xff] %vm352_vm2, %v368_v27 }
  0xff   : > { %v333_v28 = vpop.permute.xlu1 %332  ;;  %v339_v29 = vpop.permute.xlu2 %338 }
 0x100   : > { %355 = vst.msk [vmem:[%s220_s9 + $0x10] sm:$0xff] %vm352_vm2, %v333_v28  ;;  %v329_v30 = vpop.permute.xlu0 %328 }
 0x101   : > { %358 = vst.msk [vmem:[%s220_s9 + $0x28] sm:$0xff] %vm352_vm2, %v339_v29 }
 0x102   : > { %353 = vst.msk [vmem:[%s220_s9] sm:$0xff] %vm352_vm2, %v329_v30 }
 0x107   : > { %v366_v31 = vpop.permute.xlu1 %365  ;;  %v374_v32 = vpop.permute.xlu2 %373 }
 0x108   : > { %387 = vst.msk [vmem:[%s654_s6 + $0x10] sm:$0xff] %vm352_vm2, %v366_v31  ;;  %v341_v33 = vpop.permute.xlu0 %340 }
 0x109   : > { %391 = vst.msk [vmem:[%s654_s6 + $0x30] sm:$0xff] %vm352_vm2, %v374_v32 }
 0x10a   : > { %359 = vst.msk [vmem:[%s220_s9 + $0x30] sm:$0xff] %vm352_vm2, %v341_v33 }
 0x10f   : > { %v335_v34 = vpop.permute.xlu1 %334 }
 0x110   : > { %v370_v35 = vpop.permute.xlu0 %369  ;;  %356 = vst.msk [vmem:[%s220_s9 + $0x18] sm:$0xff] %vm352_vm2, %v335_v34 }
 0x111   : > { %389 = vst.msk [vmem:[%s654_s6 + $0x20] sm:$0xff] %vm352_vm2, %v370_v35 }
 0x117   : > { %v343_v36 = vpop.permute.xlu1 %342 }
 0x118   : > { %v331_v37 = vpop.permute.xlu0 %330  ;;  %360 = vst.msk [vmem:[%s220_s9 + $0x38] sm:$0xff] %vm352_vm2, %v343_v36 }
 0x119   : > { %354 = vst.msk [vmem:[%s220_s9 + $0x8] sm:$0xff] %vm352_vm2, %v331_v37 }
 0x11f   : > { %v372_v38 = vpop.permute.xlu1 %371 }
 0x120   : > { %v364_v39 = vpop.permute.xlu0 %363  ;;  %390 = vst.msk [vmem:[%s654_s6 + $0x28] sm:$0xff] %vm352_vm2, %v372_v38 }
 0x121   : > { %386 = vst.msk [vmem:[%s654_s6 + $0x8] sm:$0xff] %vm352_vm2, %v364_v39 }
 0x128   : > { %v376_v40 = vpop.permute.xlu0 %375 }
 0x129   : > { %392 = vst.msk [vmem:[%s654_s6 + $0x38] sm:$0xff] %vm352_vm2, %v376_v40 }
 0x12a PF: > { %s15_s15 = sadd.s32 1, %s559_s15  }
 0x12b   : > { %p12_p4 = scmp.ge.s32.totalorder %s15_s15, 4  }
 0x12d   :  { %14 = sbr.rel (!%p12_p4) target bundleno = 1 (0x1), region = 82 }

</bundles_post_ra>
